<compile_context>
chip_gen: v7x
topology: tpu7x:2x2x1
jax: 0.10.0
libtpu: 0.0.40
codegen_flags: <defaults>
</compile_context>

<pallas_src>
import math
import functools
import numpy as np
import jax
import jax.numpy as jnp
from jax.experimental import pallas as pl
from jax.experimental.pallas import tpu as pltpu


# ----------------------------- in-kernel math ------------------------------

def _erf(x):
    # Abramowitz & Stegun 7.1.26 rational approximation (|err| < 1.5e-7).
    a1, a2, a3, a4, a5 = 0.254829592, -0.284496736, 1.421413741, -1.453152027, 1.061405429
    p = 0.3275911
    s = jnp.where(x < 0.0, -1.0, 1.0)
    ax = jnp.abs(x)
    t = 1.0 / (1.0 + p * ax)
    poly = ((((a5 * t + a4) * t + a3) * t + a2) * t + a1) * t
    return s * (1.0 - poly * jnp.exp(-ax * ax))


def _gelu_exact(x):
    # nn.GELU() default (erf-based, approximate='none')
    return 0.5 * x * (1.0 + _erf(x * (1.0 / math.sqrt(2.0))))


def _layernorm(x, w, b, eps=1e-5):
    mu = jnp.mean(x, axis=-1, keepdims=True)
    var = jnp.mean((x - mu) ** 2, axis=-1, keepdims=True)
    return (x - mu) * jax.lax.rsqrt(var + eps) * w + b


# --------------------- Kernel A: LN1 + fused QKV + RoPE ---------------------

def qkv_rope_kernel(x_ref, cos_ref, sin_ref, ln1_w_ref, ln1_b_ref,
                    wqkv_ref, bqkv_ref, q_ref, k_ref, v_ref, *, embed_dim):
    E = embed_dim
    E2 = E // 2
    x = x_ref[0]                                              # (TR, E) f32
    xn = _layernorm(x, ln1_w_ref[...], ln1_b_ref[...])
    # Single fused bf16 GEMM for Q/K/V (RoPE even/odd split baked into Wq/Wk cols).
    qkv = jnp.dot(xn.astype(jnp.bfloat16), wqkv_ref[...],
                  preferred_element_type=jnp.float32) + bqkv_ref[...]
    cos, sin = cos_ref[...], sin_ref[...]                     # (TR, E2) f32

    def rope_split(t):
        # Split layout: first E/2 cols = rotary-even comps (head-major),
        # last E/2 cols = rotary-odd comps. Full-width VPU rotation, no scratch.
        te, to = t[:, :E2], t[:, E2:]
        return jnp.concatenate([te * cos - to * sin, te * sin + to * cos], axis=-1)

    q_ref[0] = rope_split(qkv[:, :E]).astype(q_ref.dtype)
    k_ref[0] = rope_split(qkv[:, E:2 * E]).astype(k_ref.dtype)
    v_ref[0] = qkv[:, 2 * E:].astype(v_ref.dtype)


# ------------- Kernel B: flash attention (hybrid masks) + out-proj + FFN -------------

def attn_ffn_kernel(x_ref, q_ref, k_ref, v_ref,
                    wo_ref, bo_ref, ln2_w_ref, ln2_b_ref,
                    w1_ref, b1_ref, w2_ref, b2_ref,
                    out_ref, m_scr, l_scr, acc_scr,
                    *, num_heads, causal_heads, head_dim, window,
                    seq_len, q_block, kv_block, masked_tail):
    H, Dh, W = num_heads, head_dim, window
    half = Dh // 2
    E = H * Dh
    E2 = E // 2
    TQ, TK = q_block, kv_block
    scale = jnp.float32(1.0 / math.sqrt(Dh))
    neg_inf = jnp.float32(-jnp.inf)
    bf16 = jnp.bfloat16

    qi = pl.program_id(1)
    ki = pl.program_id(2)
    n_kv = pl.num_programs(2)
    r0 = qi * TQ
    c0 = ki * TK

    @pl.when(ki == 0)
    def _init():
        m_scr[...] = jnp.full_like(m_scr, -1e30)   # finite init keeps alpha NaN-free
        l_scr[...] = jnp.zeros_like(l_scr)
        acc_scr[...] = jnp.zeros_like(acc_scr)

    # Hybrid masks for this (q-block, kv-block) tile (shared by all heads; no
    # score slicing / concatenation anywhere).
    row = r0 + jax.lax.broadcasted_iota(jnp.int32, (TQ, TK), 0)
    col = c0 + jax.lax.broadcasted_iota(jnp.int32, (TQ, TK), 1)
    causal_dis = col > row
    sparse_dis = causal_dis | (col < row - (W - 1))
    if masked_tail:
        pad_dis = col >= seq_len
        causal_dis = causal_dis | pad_dis
        sparse_dis = sparse_dis | pad_dis

    # Exact scalar block-skip conditions (a block is skipped only if no element
    # in it is allowed for that head group).
    r1 = r0 + (TQ - 1)
    c1 = c0 + (TK - 1)
    cond_causal = (c0 <= r1) & (c0 < seq_len)
    cond_sparse = cond_causal & (c1 >= r0 - (W - 1))

    qr = q_ref[0]       # (TQ, E) bf16, split [even | odd] column layout
    kr = k_ref[0]       # (TK, E) bf16, split layout
    vv = v_ref[0]       # (TK, E) bf16, natural head-major layout

    nt_dims = (((1,), (1,)), ((), ()))   # q @ k^T: contract last dims of both

    for h in range(H):
        is_causal = h < causal_heads
        dis_h = causal_dis if is_causal else sparse_dis
        cond_h = cond_causal if is_causal else cond_sparse

        def _update(h=h, dis=dis_h):
            # Per-head score = even-half dot + odd-half dot (lane slices feed the
            # MXU directly; no concatenated per-head copies, no RoPE scratch).
            qe = qr[:, h * half:(h + 1) * half]
            qo = qr[:, E2 + h * half:E2 + (h + 1) * half]
            ke = kr[:, h * half:(h + 1) * half]
            ko = kr[:, E2 + h * half:E2 + (h + 1) * half]
            s = (jax.lax.dot_general(qe, ke, nt_dims, preferred_element_type=jnp.float32) +
                 jax.lax.dot_general(qo, ko, nt_dims, preferred_element_type=jnp.float32)) * scale
            s = jnp.where(dis, neg_inf, s)
            # Online softmax update for this head.
            m_prev = m_scr[h]
            m_cur = jnp.maximum(m_prev, jnp.max(s, axis=-1, keepdims=True))
            alpha = jnp.exp(m_prev - m_cur)
            p = jnp.exp(s - m_cur)
            l_scr[h] = alpha * l_scr[h] + jnp.sum(p, axis=-1, keepdims=True)
            vh = vv[:, h * Dh:(h + 1) * Dh]
            acc_scr[h] = alpha * acc_scr[h] + jnp.dot(
                p.astype(bf16), vh, preferred_element_type=jnp.float32)
            m_scr[h] = m_cur

        pl.when(cond_h)(_update)

    @pl.when(ki == n_kv - 1)
    def _finalize():
        # Output projection: contract per-head acc against Wo (H, Dh, E) and
        # accumulate in registers (no att_scr scratch, no masked reassembly stores).
        attn = jnp.zeros((TQ, E), jnp.float32)
        for h in range(H):
            l = l_scr[h]
            l = jnp.where(l <= 0.0, 1.0, l)          # only hit by padded tail rows
            o_h = acc_scr[h] * pl.reciprocal(l, approx=True)
            attn = attn + jnp.dot(o_h.astype(bf16), wo_ref[h],
                                  preferred_element_type=jnp.float32)
        attn = attn + bo_ref[...]

        x1 = x_ref[0] + attn                 # residual (dropout/drop_path = identity)

        # ---- LayerNorm 2 + FFN (bf16 MXU operands, f32 accumulate) ----
        xn2 = _layernorm(x1, ln2_w_ref[...], ln2_b_ref[...])
        hdn = jnp.dot(xn2.astype(bf16), w1_ref[...],
                      preferred_element_type=jnp.float32) + b1_ref[...]
        hdn = _gelu_exact(hdn)
        ffn = jnp.dot(hdn.astype(bf16), w2_ref[...],
                      preferred_element_type=jnp.float32) + b2_ref[...]
        out_ref[0] = (x1 + ffn).astype(out_ref.dtype)


# -------------------------------- wrapper -----------------------------------

def transformer_block_pallas(x, P, *, num_heads, causal_heads, sparse_window_size):
    B, S, E = x.shape
    H = num_heads
    Dh = E // H
    half = Dh // 2
    E2 = E // 2
    F = P["W1"].shape[0]
    W = int(sparse_window_size)
    assert E % H == 0 and Dh % 2 == 0
    assert 0 <= causal_heads <= H
    assert W >= 1, "sparse_window_size must be >= 1 (W=0 fully masks sparse heads)"

    # ---- tiling / padding (ragged S handled by zero-pad + in-kernel masking) ----
    TQ = 128 if S >= 128 else S
    TK = TQ
    S_pad = ((S + TQ - 1) // TQ) * TQ
    nQ = S_pad // TQ
    nKV = S_pad // TK
    masked_tail = S_pad > S
    x_p = jnp.pad(x, ((0, 0), (0, S_pad - S), (0, 0))) if masked_tail else x

    # ---- rotary tables, pre-tiled to (S_pad, E/2) for lane-dense full-width RoPE ----
    inv_freq = 1.0 / (10000.0 ** (jnp.arange(0, Dh, 2, dtype=jnp.float32) / Dh))
    t = jnp.arange(S_pad, dtype=jnp.float32)
    freqs = t[:, None] * inv_freq[None, :]                    # (S_pad, half)
    cos = jnp.tile(jnp.cos(freqs), (1, H))                    # (S_pad, E/2)
    sin = jnp.tile(jnp.sin(freqs), (1, H))

    # ---- weight prep: split-layout permutation baked into Wq/Wk, all MXU weights bf16 ----
    even_idx = np.concatenate([h * Dh + np.arange(0, Dh, 2) for h in range(H)])
    odd_idx = np.concatenate([h * Dh + np.arange(1, Dh, 2) for h in range(H)])
    perm = np.concatenate([even_idx, odd_idx]).astype(np.int32)     # (E,)

    wq = P["Wq"].T[:, perm]
    bq = P["bq"][perm]
    wk = P["Wk"].T[:, perm]
    bk = P["bk"][perm]
    wv = P["Wv"].T
    bv = P["bv"]
    wqkv = jnp.concatenate([wq, wk, wv], axis=1).astype(jnp.bfloat16)   # (E, 3E)
    bqkv = jnp.concatenate([bq, bk, bv]).reshape(1, 3 * E).astype(jnp.float32)

    ln1_w, ln1_b = P["ln1_w"].reshape(1, E), P["ln1_b"].reshape(1, E)
    ln2_w, ln2_b = P["ln2_w"].reshape(1, E), P["ln2_b"].reshape(1, E)
    wo3 = P["Wo"].T.reshape(H, Dh, E).astype(jnp.bfloat16)              # (H, Dh, E)
    bo = P["bo"].reshape(1, E)
    w1 = P["W1"].T.astype(jnp.bfloat16)                                  # (E, F)
    b1 = P["b1"].reshape(1, F)
    w2 = P["W2"].T.astype(jnp.bfloat16)                                  # (F, E)
    b2 = P["b2"].reshape(1, E)

    def _vmem_limit(nbytes):
        return int(min(128 * 1024 * 1024, max(4 * 1024 * 1024, nbytes)))

    est_a = (TQ * E * 4 + 2 * TQ * E2 * 4 + 3 * TQ * E * 2
             + E * 3 * E * 2 + 3 * E * 4 + 4 * E * 4)
    est_b = (2 * TQ * E * 4 + TQ * E * 2 + 2 * TK * E * 2 + TQ * E * 4
             + E * E * 2 + 2 * E * F * 2 + (4 * E + 2 * F) * 4
             + H * TQ * (Dh + 2) * 4)
    vmem_a = _vmem_limit(4 * est_a)
    vmem_b = _vmem_limit(4 * est_b)

    # ---------------- Kernel A call: rotated Q/K and V computed ONCE ----------------
    qkv_kernel = functools.partial(qkv_rope_kernel, embed_dim=E)

    def c2(shape):
        n = len(shape)
        return pl.BlockSpec(shape, lambda b, r, _n=n: (0,) * _n)

    kv_struct = jax.ShapeDtypeStruct((B, S_pad, E), jnp.bfloat16)
    flops_a = 2 * B * S_pad * E * 3 * E + 6 * B * S_pad * E
    bytes_a = (4 * B * S_pad * E + 3 * 2 * B * S_pad * E
               + 2 * 3 * E * E + 4 * 2 * S_pad * E2)

    q_rot, k_rot, v_heads = pl.pallas_call(
        qkv_kernel,
        out_shape=(kv_struct, kv_struct, kv_struct),
        grid=(B, nQ),
        in_specs=[
            pl.BlockSpec((1, TQ, E), lambda b, r: (b, r, 0)),    # x row block
            pl.BlockSpec((TQ, E2), lambda b, r: (r, 0)),         # cos (row block)
            pl.BlockSpec((TQ, E2), lambda b, r: (r, 0)),         # sin (row block)
            c2((1, E)), c2((1, E)),                              # ln1 w, b
            c2((E, 3 * E)), c2((1, 3 * E)),                      # fused Wqkv, bqkv
        ],
        out_specs=(pl.BlockSpec((1, TQ, E), lambda b, r: (b, r, 0)),) * 3,
        compiler_params=pltpu.CompilerParams(
            dimension_semantics=("parallel", "parallel"),
            vmem_limit_bytes=vmem_a),
        cost_estimate=pl.CostEstimate(
            flops=int(flops_a), transcendentals=0, bytes_accessed=int(bytes_a)),
    )(x_p, cos, sin, ln1_w, ln1_b, wqkv, bqkv)

    # ------------- Kernel B call: flash attention + out-proj + FFN -------------
    attn_kernel = functools.partial(
        attn_ffn_kernel, num_heads=H, causal_heads=causal_heads, head_dim=Dh,
        window=W, seq_len=S, q_block=TQ, kv_block=TK, masked_tail=masked_tail)

    def c3(shape):
        n = len(shape)
        return pl.BlockSpec(shape, lambda b, qi, ki, _n=n: (0,) * _n)

    flops_b = B * (4 * S_pad * S_pad * E + 2 * S_pad * E * E + 4 * S_pad * E * F)
    trans_b = B * (H * S_pad * S_pad + S_pad * F)
    bytes_b = (B * (S_pad * E * 4 + S_pad * E * 2 + nQ * 2 * S_pad * E * 2
                    + S_pad * E * 4)
               + 2 * (E * E + 2 * E * F))

    out = pl.pallas_call(
        attn_kernel,
        out_shape=jax.ShapeDtypeStruct((B, S_pad, E), x.dtype),
        grid=(B, nQ, nKV),
        in_specs=[
            pl.BlockSpec((1, TQ, E), lambda b, qi, ki: (b, qi, 0)),   # x (residual)
            pl.BlockSpec((1, TQ, E), lambda b, qi, ki: (b, qi, 0)),   # rotated Q
            pl.BlockSpec((1, TK, E), lambda b, qi, ki: (b, ki, 0)),   # rotated K tile
            pl.BlockSpec((1, TK, E), lambda b, qi, ki: (b, ki, 0)),   # V tile
            c3((H, Dh, E)), c3((1, E)),                               # Wo (H,Dh,E), bo
            c3((1, E)), c3((1, E)),                                   # ln2 w, b
            c3((E, F)), c3((1, F)),                                   # W1, b1
            c3((F, E)), c3((1, E)),                                   # W2, b2
        ],
        out_specs=pl.BlockSpec((1, TQ, E), lambda b, qi, ki: (b, qi, 0)),
        scratch_shapes=[
            pltpu.VMEM((H, TQ, 1), jnp.float32),    # running max
            pltpu.VMEM((H, TQ, 1), jnp.float32),    # running sum
            pltpu.VMEM((H, TQ, Dh), jnp.float32),   # running weighted V
        ],
        compiler_params=pltpu.CompilerParams(
            dimension_semantics=("parallel", "parallel", "arbitrary"),
            vmem_limit_bytes=vmem_b),
        cost_estimate=pl.CostEstimate(
            flops=int(flops_b), transcendentals=int(trans_b),
            bytes_accessed=int(bytes_b)),
    )(x_p, q_rot, k_rot, v_heads, wo3, bo, ln2_w, ln2_b, w1, b1, w2, b2)

    if masked_tail:
        out = out[:, :S, :]
    return out


# ------------------------- pure-JAX reference -------------------------------

def transformer_block_ref(x, P, *, num_heads, causal_heads, sparse_window_size):
    B, S, E = x.shape
    H = num_heads
    Dh = E // H

    def ln(v, w, b, eps=1e-5):
        mu = jnp.mean(v, axis=-1, keepdims=True)
        var = jnp.mean((v - mu) ** 2, axis=-1, keepdims=True)
        return (v - mu) / jnp.sqrt(var + eps) * w + b

    def rope(v, cos, sin):
        ve, vo = v[..., 0::2], v[..., 1::2]
        re = ve * cos - vo * sin
        ro = ve * sin + vo * cos
        return jnp.stack([re, ro], axis=-1).reshape(v.shape)

    xn = ln(x, P["ln1_w"], P["ln1_b"])
    q = xn @ P["Wq"].T + P["bq"]
    k = xn @ P["Wk"].T + P["bk"]
    v = xn @ P["Wv"].T + P["bv"]
    q = q.reshape(B, S, H, Dh).transpose(0, 2, 1, 3)
    k = k.reshape(B, S, H, Dh).transpose(0, 2, 1, 3)
    v = v.reshape(B, S, H, Dh).transpose(0, 2, 1, 3)

    inv_freq = 1.0 / (10000.0 ** (jnp.arange(0, Dh, 2, dtype=jnp.float32) / Dh))
    freqs = jnp.arange(S, dtype=jnp.float32)[:, None] * inv_freq[None, :]
    cos, sin = jnp.cos(freqs)[None, None], jnp.sin(freqs)[None, None]
    q, k = rope(q, cos, sin), rope(k, cos, sin)

    scores = jnp.einsum("bhqd,bhkd->bhqk", q, k) / math.sqrt(Dh)
    ci = jnp.arange(S)
    causal_dis = ci[None, :] > ci[:, None]
    sparse_dis = ~((ci[None, :] <= ci[:, None]) &
                   (ci[None, :] >= ci[:, None] - (sparse_window_size - 1)))
    neg_inf = jnp.float32(-jnp.inf)
    head_dis = jnp.stack([causal_dis if h < causal_heads else sparse_dis
                          for h in range(H)])
    scores = jnp.where(head_dis[None], neg_inf, scores)
    all_masked = jnp.all(scores == neg_inf, axis=-1, keepdims=True)
    scores = jnp.where(all_masked, 0.0, scores)
    attn = jax.nn.softmax(scores, axis=-1)
    out = jnp.einsum("bhqk,bhkd->bhqd", attn, v)
    out = out.transpose(0, 2, 1, 3).reshape(B, S, E)
    out = out @ P["Wo"].T + P["bo"]
    x = x + out
    xn2 = ln(x, P["ln2_w"], P["ln2_b"])
    h1 = jax.nn.gelu(xn2 @ P["W1"].T + P["b1"], approximate=False)
    return x + h1 @ P["W2"].T + P["b2"]


# --------------------------------- params -----------------------------------

def make_params(key, embed_dim, num_heads, ff_dim):
    E, F = embed_dim, ff_dim
    ks = jax.random.split(key, 8)

    def lin(k, out_d, in_d):
        kw, kb = jax.random.split(k)
        return (jax.random.normal(kw, (out_d, in_d), jnp.float32) * 0.05,
                jax.random.normal(kb, (out_d,), jnp.float32) * 0.05)

    P = {}
    P["ln1_w"] = 1.0 + 0.1 * jax.random.normal(ks[0], (E,), jnp.float32)
    P["ln1_b"] = 0.1 * jax.random.normal(ks[1], (E,), jnp.float32)
    P["Wq"], P["bq"] = lin(ks[2], E, E)
    P["Wk"], P["bk"] = lin(ks[3], E, E)
    P["Wv"], P["bv"] = lin(ks[4], E, E)
    P["Wo"], P["bo"] = lin(ks[5], E, E)
    P["ln2_w"] = 1.0 + 0.1 * jax.random.normal(ks[6], (E,), jnp.float32)
    P["ln2_b"] = 0.1 * jax.random.normal(ks[7], (E,), jnp.float32)
    k1, k2 = jax.random.split(ks[0])
    P["W1"], P["b1"] = lin(k1, F, E)
    P["W2"], P["b2"] = lin(k2, E, F)
    return P


if __name__ == "__main__":
    B, S, E, H, F = 2, 8, 32, 4, 64          # batch, seq, embed, heads, ff_dim
    causal_heads = H // 2                    # TransformerBlock default (None -> H//2)
    sparse_window_size = 4
    # TODO(synk): dropout/drop_path are stochastic; treated as identity (eval mode).

    key = jax.random.PRNGKey(0)
    kx, kp = jax.random.split(key)
    x = jax.random.normal(kx, (B, S, E), jnp.float32)
    P = make_params(kp, E, H, F)

    out = transformer_block_pallas(x, P, num_heads=H, causal_heads=causal_heads,
                                   sparse_window_size=sparse_window_size)
    out = jax.block_until_ready(out)

    ref = transformer_block_ref(x, P, num_heads=H, causal_heads=causal_heads,
                                sparse_window_size=sparse_window_size)
    assert out.shape == (B, S, E)
    # Kernel uses bf16 MXU operands (f32 accumulation) per the perf review, so
    # compare against the f32 reference at bf16-level tolerance.
    err = float(jnp.max(jnp.abs(out - ref)))
    assert jnp.allclose(out, ref, atol=2e-2, rtol=2e-2), f"max abs err {err}"
    print("KERNEL_OK")
</pallas_src>

<mosaic_0001>
module attributes {stable_mosaic.version = 11 : i64} {
  func.func @qkv_rope_kernel(%arg0: i32, %arg1: i32, %arg2: memref<1x8x32xf32, #tpu.memory_space<vmem>>, %arg3: memref<8x16xf32, #tpu.memory_space<vmem>>, %arg4: memref<8x16xf32, #tpu.memory_space<vmem>>, %arg5: memref<1x32xf32, #tpu.memory_space<vmem>>, %arg6: memref<1x32xf32, #tpu.memory_space<vmem>>, %arg7: memref<32x96xbf16, #tpu.memory_space<vmem>>, %arg8: memref<1x96xf32, #tpu.memory_space<vmem>>, %arg9: memref<1x8x32xbf16, #tpu.memory_space<vmem>>, %arg10: memref<1x8x32xbf16, #tpu.memory_space<vmem>>, %arg11: memref<1x8x32xbf16, #tpu.memory_space<vmem>>) attributes {dimension_semantics = [#tpu.dimension_semantics<parallel>, #tpu.dimension_semantics<parallel>], iteration_bounds = array<i64: 2, 1>, scalar_prefetch = 0 : i64, scratch_operands = 0 : i64, tpu.core_type = #tpu.core_type<tc>, window_params = [{transform_indices = @transform_0, window_bounds = array<i64: 1, 8, 32>}, {transform_indices = @transform_1, window_bounds = array<i64: 8, 16>}, {transform_indices = @transform_2, window_bounds = array<i64: 8, 16>}, {pipeline_mode = #tpu.pipeline_mode<synchronous>, transform_indices = @transform_3, window_bounds = array<i64: 1, 32>}, {pipeline_mode = #tpu.pipeline_mode<synchronous>, transform_indices = @transform_4, window_bounds = array<i64: 1, 32>}, {pipeline_mode = #tpu.pipeline_mode<synchronous>, transform_indices = @transform_5, window_bounds = array<i64: 32, 96>}, {pipeline_mode = #tpu.pipeline_mode<synchronous>, transform_indices = @transform_6, window_bounds = array<i64: 1, 96>}, {transform_indices = @transform_7, window_bounds = array<i64: 1, 8, 32>}, {transform_indices = @transform_8, window_bounds = array<i64: 1, 8, 32>}, {transform_indices = @transform_9, window_bounds = array<i64: 1, 8, 32>}]} {
    %c0 = arith.constant 0 : index
    %c0_0 = arith.constant 0 : index
    %c0_1 = arith.constant 0 : index
    %0 = vector.load %arg2[%c0, %c0_0, %c0_1] : memref<1x8x32xf32, #tpu.memory_space<vmem>>, vector<1x8x32xf32>
    %1 = vector.shape_cast %0 : vector<1x8x32xf32> to vector<8x32xf32>
    %c0_2 = arith.constant 0 : index
    %c0_3 = arith.constant 0 : index
    %2 = vector.load %arg5[%c0_2, %c0_3] : memref<1x32xf32, #tpu.memory_space<vmem>>, vector<1x32xf32>
    %c0_4 = arith.constant 0 : index
    %c0_5 = arith.constant 0 : index
    %3 = vector.load %arg6[%c0_4, %c0_5] : memref<1x32xf32, #tpu.memory_space<vmem>>, vector<1x32xf32>
    %cst = arith.constant dense<0.000000e+00> : vector<8xf32>
    %4 = vector.multi_reduction <add>, %1, %cst [1] : vector<8x32xf32> to vector<8xf32>
    %5 = vector.shape_cast %4 : vector<8xf32> to vector<8x1xf32>
    %cst_6 = arith.constant 3.200000e+01 : f32
    %6 = vector.broadcast %cst_6 : f32 to vector<8x1xf32>
    %7 = arith.divf %5, %6 : vector<8x1xf32>
    %8 = vector.broadcast %7 : vector<8x1xf32> to vector<8x32xf32>
    %9 = arith.subf %1, %8 : vector<8x32xf32>
    %10 = arith.mulf %9, %9 : vector<8x32xf32>
    %cst_7 = arith.constant dense<0.000000e+00> : vector<8xf32>
    %11 = vector.multi_reduction <add>, %10, %cst_7 [1] : vector<8x32xf32> to vector<8xf32>
    %12 = vector.shape_cast %11 : vector<8xf32> to vector<8x1xf32>
    %cst_8 = arith.constant 3.200000e+01 : f32
    %13 = vector.broadcast %cst_8 : f32 to vector<8x1xf32>
    %14 = arith.divf %12, %13 : vector<8x1xf32>
    %15 = vector.broadcast %7 : vector<8x1xf32> to vector<8x32xf32>
    %16 = arith.subf %1, %15 : vector<8x32xf32>
    %cst_9 = arith.constant 9.99999974E-6 : f32
    %17 = vector.broadcast %cst_9 : f32 to vector<8x1xf32>
    %18 = arith.addf %14, %17 : vector<8x1xf32>
    %19 = math.rsqrt %18 : vector<8x1xf32>
    %20 = vector.broadcast %19 : vector<8x1xf32> to vector<8x32xf32>
    %21 = arith.mulf %16, %20 : vector<8x32xf32>
    %22 = vector.broadcast %2 : vector<1x32xf32> to vector<8x32xf32>
    %23 = arith.mulf %21, %22 : vector<8x32xf32>
    %24 = vector.broadcast %3 : vector<1x32xf32> to vector<8x32xf32>
    %25 = arith.addf %23, %24 : vector<8x32xf32>
    %26 = arith.truncf %25 : vector<8x32xf32> to vector<8x32xbf16>
    %c0_10 = arith.constant 0 : index
    %c0_11 = arith.constant 0 : index
    %27 = vector.load %arg7[%c0_10, %c0_11] : memref<32x96xbf16, #tpu.memory_space<vmem>>, vector<32x96xbf16>
    %cst_12 = arith.constant dense<0.000000e+00> : vector<8x96xf32>
    %28 = tpu.matmul %26, %27, %cst_12 {dimension_numbers = #tpu.dot_dimension_numbers<[1], [0], [0], [1], [0, 0, 1, 1], [], []>} : vector<8x32xbf16>, vector<32x96xbf16>, vector<8x96xf32> -> vector<8x96xf32>
    %c0_13 = arith.constant 0 : index
    %c0_14 = arith.constant 0 : index
    %29 = vector.load %arg8[%c0_13, %c0_14] : memref<1x96xf32, #tpu.memory_space<vmem>>, vector<1x96xf32>
    %30 = vector.broadcast %29 : vector<1x96xf32> to vector<8x96xf32>
    %31 = arith.addf %28, %30 : vector<8x96xf32>
    %c0_15 = arith.constant 0 : index
    %c0_16 = arith.constant 0 : index
    %32 = vector.load %arg3[%c0_15, %c0_16] : memref<8x16xf32, #tpu.memory_space<vmem>>, vector<8x16xf32>
    %c0_17 = arith.constant 0 : index
    %c0_18 = arith.constant 0 : index
    %33 = vector.load %arg4[%c0_17, %c0_18] : memref<8x16xf32, #tpu.memory_space<vmem>>, vector<8x16xf32>
    %34 = vector.extract_strided_slice %31 {offsets = [0, 0], sizes = [8, 32], strides = [1, 1]} : vector<8x96xf32> to vector<8x32xf32>
    %35 = vector.extract_strided_slice %34 {offsets = [0, 0], sizes = [8, 16], strides = [1, 1]} : vector<8x32xf32> to vector<8x16xf32>
    %36 = vector.extract_strided_slice %34 {offsets = [0, 16], sizes = [8, 16], strides = [1, 1]} : vector<8x32xf32> to vector<8x16xf32>
    %37 = arith.mulf %35, %32 : vector<8x16xf32>
    %38 = arith.mulf %36, %33 : vector<8x16xf32>
    %39 = arith.subf %37, %38 : vector<8x16xf32>
    %40 = arith.mulf %35, %33 : vector<8x16xf32>
    %41 = arith.mulf %36, %32 : vector<8x16xf32>
    %42 = arith.addf %40, %41 : vector<8x16xf32>
    %43 = tpu.concatenate %39, %42 in 1 : vector<8x16xf32>, vector<8x16xf32> -> vector<8x32xf32>
    %44 = arith.truncf %43 : vector<8x32xf32> to vector<8x32xbf16>
    %c0_19 = arith.constant 0 : index
    %c0_20 = arith.constant 0 : index
    %c0_21 = arith.constant 0 : index
    %45 = vector.load %arg9[%c0_19, %c0_20, %c0_21] : memref<1x8x32xbf16, #tpu.memory_space<vmem>>, vector<1x8x32xbf16>
    %46 = vector.shape_cast %45 : vector<1x8x32xbf16> to vector<8x32xbf16>
    %47 = vector.shape_cast %44 : vector<8x32xbf16> to vector<1x8x32xbf16>
    tpu.vector_store %arg9[%c0_19, %c0_20, %c0_21], %47 {strides = array<i32>} : memref<1x8x32xbf16, #tpu.memory_space<vmem>>, vector<1x8x32xbf16>,
    %48 = vector.extract_strided_slice %31 {offsets = [0, 32], sizes = [8, 32], strides = [1, 1]} : vector<8x96xf32> to vector<8x32xf32>
    %49 = vector.extract_strided_slice %48 {offsets = [0, 0], sizes = [8, 16], strides = [1, 1]} : vector<8x32xf32> to vector<8x16xf32>
    %50 = vector.extract_strided_slice %48 {offsets = [0, 16], sizes = [8, 16], strides = [1, 1]} : vector<8x32xf32> to vector<8x16xf32>
    %51 = arith.mulf %49, %32 : vector<8x16xf32>
    %52 = arith.mulf %50, %33 : vector<8x16xf32>
    %53 = arith.subf %51, %52 : vector<8x16xf32>
    %54 = arith.mulf %49, %33 : vector<8x16xf32>
    %55 = arith.mulf %50, %32 : vector<8x16xf32>
    %56 = arith.addf %54, %55 : vector<8x16xf32>
    %57 = tpu.concatenate %53, %56 in 1 : vector<8x16xf32>, vector<8x16xf32> -> vector<8x32xf32>
    %58 = arith.truncf %57 : vector<8x32xf32> to vector<8x32xbf16>
    %c0_22 = arith.constant 0 : index
    %c0_23 = arith.constant 0 : index
    %c0_24 = arith.constant 0 : index
    %59 = vector.load %arg10[%c0_22, %c0_23, %c0_24] : memref<1x8x32xbf16, #tpu.memory_space<vmem>>, vector<1x8x32xbf16>
    %60 = vector.shape_cast %59 : vector<1x8x32xbf16> to vector<8x32xbf16>
    %61 = vector.shape_cast %58 : vector<8x32xbf16> to vector<1x8x32xbf16>
    tpu.vector_store %arg10[%c0_22, %c0_23, %c0_24], %61 {strides = array<i32>} : memref<1x8x32xbf16, #tpu.memory_space<vmem>>, vector<1x8x32xbf16>,
    %62 = vector.extract_strided_slice %31 {offsets = [0, 64], sizes = [8, 32], strides = [1, 1]} : vector<8x96xf32> to vector<8x32xf32>
    %63 = arith.truncf %62 : vector<8x32xf32> to vector<8x32xbf16>
    %c0_25 = arith.constant 0 : index
    %c0_26 = arith.constant 0 : index
    %c0_27 = arith.constant 0 : index
    %64 = vector.load %arg11[%c0_25, %c0_26, %c0_27] : memref<1x8x32xbf16, #tpu.memory_space<vmem>>, vector<1x8x32xbf16>
    %65 = vector.shape_cast %64 : vector<1x8x32xbf16> to vector<8x32xbf16>
    %66 = vector.shape_cast %63 : vector<8x32xbf16> to vector<1x8x32xbf16>
    tpu.vector_store %arg11[%c0_25, %c0_26, %c0_27], %66 {strides = array<i32>} : memref<1x8x32xbf16, #tpu.memory_space<vmem>>, vector<1x8x32xbf16>,
    return
  }
  func.func @transform_0(%arg0: i32, %arg1: i32) -> (i32, i32, i32) {
    %c0_i32 = arith.constant 0 : i32
    %c0_i32_0 = arith.constant 0 : i32
    return %arg0, %arg1, %c0_i32 : i32, i32, i32
  }
  func.func @transform_1(%arg0: i32, %arg1: i32) -> (i32, i32) {
    %c0_i32 = arith.constant 0 : i32
    %c0_i32_0 = arith.constant 0 : i32
    return %arg1, %c0_i32 : i32, i32
  }
  func.func @transform_2(%arg0: i32, %arg1: i32) -> (i32, i32) {
    %c0_i32 = arith.constant 0 : i32
    %c0_i32_0 = arith.constant 0 : i32
    return %arg1, %c0_i32 : i32, i32
  }
  func.func @transform_3(%arg0: i32, %arg1: i32) -> (i32, i32) {
    %c0_i32 = arith.constant 0 : i32
    %c0_i32_0 = arith.constant 0 : i32
    %c0_i32_1 = arith.constant 0 : i32
    return %c0_i32, %c0_i32_0 : i32, i32
  }
  func.func @transform_4(%arg0: i32, %arg1: i32) -> (i32, i32) {
    %c0_i32 = arith.constant 0 : i32
    %c0_i32_0 = arith.constant 0 : i32
    %c0_i32_1 = arith.constant 0 : i32
    return %c0_i32, %c0_i32_0 : i32, i32
  }
  func.func @transform_5(%arg0: i32, %arg1: i32) -> (i32, i32) {
    %c0_i32 = arith.constant 0 : i32
    %c0_i32_0 = arith.constant 0 : i32
    %c0_i32_1 = arith.constant 0 : i32
    return %c0_i32, %c0_i32_0 : i32, i32
  }
  func.func @transform_6(%arg0: i32, %arg1: i32) -> (i32, i32) {
    %c0_i32 = arith.constant 0 : i32
    %c0_i32_0 = arith.constant 0 : i32
    %c0_i32_1 = arith.constant 0 : i32
    return %c0_i32, %c0_i32_0 : i32, i32
  }
  func.func @transform_7(%arg0: i32, %arg1: i32) -> (i32, i32, i32) {
    %c0_i32 = arith.constant 0 : i32
    %c0_i32_0 = arith.constant 0 : i32
    return %arg0, %arg1, %c0_i32 : i32, i32, i32
  }
  func.func @transform_8(%arg0: i32, %arg1: i32) -> (i32, i32, i32) {
    %c0_i32 = arith.constant 0 : i32
    %c0_i32_0 = arith.constant 0 : i32
    return %arg0, %arg1, %c0_i32 : i32, i32, i32
  }
  func.func @transform_9(%arg0: i32, %arg1: i32) -> (i32, i32, i32) {
    %c0_i32 = arith.constant 0 : i32
    %c0_i32_0 = arith.constant 0 : i32
    return %arg0, %arg1, %c0_i32 : i32, i32, i32
  }
}

</mosaic_0001>

<bundles_post_ra>
// kernel: tpu_custom_call.1
= control target key start
LH: loop header
LB: loop body
LE: loop exit
PB: predicated region body
PF: predicated region fallthrough
CT: control target
= control target key end

     0   :  { %s1614_s0 = inlined_call_operand.hbm [shape: f32[2,8,32], index: 0, kind: input, shape index: {}]   ;;  %s1615_s1 = inlined_call_operand.hbm [shape: f32[8,16], index: 1, kind: input, shape index: {}]   ;;  %s1616_s2 = inlined_call_operand.hbm [shape: f32[8,16], index: 2, kind: input, shape index: {}]   ;;  %s1617_s3 = inlined_call_operand.vmem [shape: f32[1,32], index: 3, kind: input, shape index: {}]   ;;  %s1618_s4 = inlined_call_operand.vmem [shape: f32[1,32], index: 4, kind: input, shape index: {}]   ;;  %s1619_s5 = inlined_call_operand.vmem [shape: bf16[32,96], index: 5, kind: input, shape index: {}]   ;;  %s1620_s6 = inlined_call_operand.vmem [shape: f32[1,96], index: 6, kind: input, shape index: {}]   ;;  %s1621_s7 = inlined_call_operand.hbm [shape: bf16[2,8,32], index: 7, kind: output, shape index: {0}]   ;;  %s1622_s8 = inlined_call_operand.hbm [shape: bf16[2,8,32], index: 8, kind: output, shape index: {1}]   ;;  %s1623_s9 = inlined_call_operand.hbm [shape: bf16[2,8,32], index: 9, kind: output, shape index: {2}]  }
   0x1   :  { %1630 = sst [smem:[#allocation17_spill]] %s1614_s0 }
   0x2   :  { %1631 = sst [smem:[#allocation18_spill]] %s1615_s1 }
   0x3   :  { %1632 = sst [smem:[#allocation19_spill]] %s1616_s2 }
   0x4   :  { %1633 = sst [smem:[#allocation20_spill]] %s1617_s3 }
   0x5   :  { %1634 = sst [smem:[#allocation21_spill]] %s1618_s4 }
   0x6   :  { %15 = vsyncpa [#allocation3], 0 }
   0x7   :  { %17 = vsyncpa [#allocation3 + $0x1], 0 }
   0x8   :  { %18 = vsyncpa [#allocation6], 0 }
   0x9   :  { %19 = vsyncpa [#allocation4], 0 }
   0xa   :  { %21 = vsyncpa [#allocation4 + $0x1], 0 }
   0xb   :  { %22 = vsyncpa [#allocation10], 0 }
   0xc   :  { %24 = vsyncpa [#allocation10 + $0x1], 0  ;;  %s1268_s30 = smov 0   ;;  %s1270_s10 = smov 0  }
   0xd   :  { %s1272_s11 = smov 0   ;;  %s1274_s12 = smov 0  }
   0xe   :  { %s1276_s13 = smov 0   ;;  %s1278_s14 = smov 0  }
   0xf LB: > { %s1299_s15 = sadd.s32 4294967295, %s1202_s14   ;;  %s1624_s16 = sadd.s32 4294967294, %s1202_s14   ;;  %s1202_s14 = sphi %s1278_s14, %s30_s14   ;;  %s1198_s13 = sphi %s1276_s13, %s1661_s13   ;;  %s1194_s12 = sphi %s1274_s12, %s1660_s12   ;;  %s1190_s11 = sphi %s1272_s11, %s1659_s11   ;;  %s1186_s10 = sphi %s1270_s10, %s1658_s10   ;;  %s1182_s30 = sphi %s1268_s30, %s1657_s30  }
  0x10   : > { %p64_p0 = scmp.ne.s32.totalorder %s1186_s10, %s1182_s30  ;;  %p1625_p1 = scmp.eq.s32.totalorder %s1299_s15, 0 }
  0x11   : > { %p232_p3 = scmp.eq.s32.totalorder %s1624_s16, 1  ;;  %p825_p5 = scmp.ge.s32.totalorder %s1202_s14, 1 }
  0x12   : > { %p1310_p4 = por %p1625_p1, %p64_p0  ;;  %p295_p7 = scmp.lt.s32.totalorder %s1202_s14, 3 }
  0x13   : > { %p1315_p6 = por %p232_p3, %p64_p0  ;;  %s1204_s20 = smov [#allocation5]  }
  0x14   : > { %s1635_s17 = scalar_select %p1310_p4, 1, 0 }
  0x15   : > { %s1636_s18 = scalar_select %p1315_p6, 1, 0 }
  0x16   : > { %p1320_p8 = pnand %p825_p5, %p295_p7  ;;  %s310_s21 = sshll.u32 %s1204_s20, 4  ;;  %s311_s21 = int_to_ptr.vmem [resolvable:$true] %s310_s21 }
  0x17   : > { %1637 = sst [smem:[#allocation16_spill]] %s1636_s18  ;;  %s1205_s22 = smov [#allocation7]  }
  0x18   : > { %s1638_s19 = scalar_select %p1320_p8, 1, 0 }
  0x19   : > { %p881_p10 = pneg %p1320_p8  ;;  %s323_s23 = sshll.u32 %s1205_s22, 4  ;;  %s1333_s23 = int_to_ptr.vmem [resolvable:$true] %s323_s23 }
  0x1a   : > { %s1640_s1 = sld [smem:[#allocation18_spill]] }
  0x1b   : > { %p1329_p11 = pnand %p881_p10, %p1625_p1 }
  0x1d   : > { %p972_p13 = pneg %p1329_p11 }
  0x20   : > { %s970_s27 = scalar_lea.hbm %s1640_s1, 128 }
  0x21   : > { %p971_p12 = scmp.ne.s32.totalorder %s1640_s1, %s970_s27  ;;  %p977_p5 = scmp.lt.u32.totalorder %s970_s27, %s1640_s1 }
  0x23   : > { %p973_p0 = pnand %p972_p13, %p971_p12 }
  0x25   : > { %p974_p3 = pneg %p973_p0 }
  0x27   : > { %p979_p7 = pnand %p977_p5, %p974_p3 }
  0x29   : > { %982 = shalt.err (!%p979_p7)
}
  0x2a   : > { %s983_s16 = scalar_lea.vmem %s311_s21, 128  ;;  %p991_p2 = scmp.lt.s32.totalorder %s311_s21, %s311_s21 }
  0x2b   : > { %p984_p10 = scmp.ne.s32.totalorder %s311_s21, %s983_s16  ;;  %p992_p6 = scmp.lt.s32.totalorder %s983_s16, %s983_s16 }
  0x2d   : > { %p986_p9 = pnand %p984_p10, %p972_p13  ;;  %p993_p4 = por %p992_p6, %p991_p2 }
  0x2f   : > { %p987_p1 = pneg %p986_p9 }
  0x31   : > { %p994_p8 = pnand %p993_p4, %p987_p1 }
  0x33   : > { %997 = shalt.err (!%p994_p8)
}
  0x34   : > { %884 = dma.hbm_to_vmem [thread:$0]  (!%p1329_p11), %s1640_s1, 128, %s311_s21, [#allocation6]  }
  0x35   : > { %s1641_s2 = sld [smem:[#allocation19_spill]] }
  0x3b   : > { %s998_s29 = scalar_lea.hbm %s1641_s2, 128 }
  0x3c   : > { %p999_p9 = scmp.ne.s32.totalorder %s1641_s2, %s998_s29  ;;  %p1005_p4 = scmp.lt.u32.totalorder %s998_s29, %s1641_s2 }
  0x3e   : > { %p1001_p2 = pnand %p999_p9, %p972_p13 }
  0x40   : > { %p1002_p1 = pneg %p1001_p2 }
  0x42   : > { %p1007_p6 = pnand %p1005_p4, %p1002_p1 }
  0x44   : > { %1010 = shalt.err (!%p1007_p6)
}
  0x45   : > { %s1011_s21 = scalar_lea.vmem %s1333_s23, 128  ;;  %p1019_p3 = scmp.lt.s32.totalorder %s1333_s23, %s1333_s23 }
  0x46   : > { %p1012_p8 = scmp.ne.s32.totalorder %s1333_s23, %s1011_s21  ;;  %p1020_p5 = scmp.lt.s32.totalorder %s1011_s21, %s1011_s21 }
  0x48   : > { %p1014_p12 = pnand %p1012_p8, %p972_p13  ;;  %p1021_p7 = por %p1020_p5, %p1019_p3 }
  0x4a   : > { %p1015_p0 = pneg %p1014_p12 }
  0x4c   : > { %p1022_p10 = pnand %p1021_p7, %p1015_p0 }
  0x4e   : > { %1025 = shalt.err (!%p1022_p10)
}
  0x4f   : > { %887 = dma.hbm_to_vmem [thread:$0]  (!%p1329_p11), %s1641_s2, 128, %s1333_s23, [#allocation6]  }
  0x50   : > { %s42_s26 = sadd.s32 1, %s1198_s13  ;;  %s51_s27 = sadd.s32 1, %s1190_s11 }
  0x51   : > { %p44_p13 = scmp.ge.s32.totalorder %s42_s26, 2  ;;  %p58_p9 = scmp.ne.s32.totalorder %s1190_s11, %s1186_s10 }
  0x52   : > { %p59_p2 = scmp.eq.s32.totalorder %s1202_s14, 0  ;;  %p904_p1 = scmp.lt.s32.totalorder %s1202_s14, 2 }
  0x53   : > { %s1663_s26 = smov (%p44_p13, %s42_s26), 0  ;;  %p1642_p6 = scmp.eq.s32.totalorder %s1299_s15, 1 }
  0x54   : > { %p60_p4 = por %p59_p2, %p58_p9  ;;  %s46_s28 = ssub.s32 %s1198_s13, %s1663_s26 }
  0x55   : > { %p1392_p8 = por %p1642_p6, %p58_p9  ;;  %s346_s29 = sand.u32 1, %s1190_s11  }
  0x56   : > { %p49_p12 = scmp.eq.s32.totalorder %s46_s28, 0  ;;  %s829_s23 = sshll.u32 %s346_s29, 3 }
  0x57   : > { %s830_s20 = sshll.u32 %s1198_s13, 7  ;;  %s1644_s0 = sld [smem:[#allocation17_spill]] }
  0x58   : > { %s1401_s22 = scalar_select %p49_p12, %s1190_s11, %s51_s27  }
  0x59   : > { %s350_s25 = scalar_lea.vmem [#allocation2], %s829_s23  ;;  %p1410_p11 = pnand %p904_p1, %p60_p4 }
  0x5a   : > { %s358_s1 = sshll.u32 %s350_s25, 4  ;;  %s347_s27 = scalar_lea.sflag [#allocation3], %s346_s29  ;;  %s1414_s1 = int_to_ptr.vmem [resolvable:$true] %s358_s1 }
  0x5b   : > { %p1028_p3 = pneg %p1410_p11 }
  0x5d   : > { %s1406_s18 = scalar_lea.hbm %s1644_s0, %s830_s20  ;;  %s1031_s16 = scalar_lea.hbm %s1644_s0, 256 }
  0x5e   : > { %s1026_s28 = scalar_lea.hbm %s1406_s18, 128  ;;  %p1032_p10 = scmp.lt.u32.totalorder %s1406_s18, %s1644_s0 }
  0x5f   : > { %p1027_p0 = scmp.ne.s32.totalorder %s1406_s18, %s1026_s28  ;;  %p1033_p13 = scmp.lt.u32.totalorder %s1031_s16, %s1026_s28 }
  0x60   : > { %p1035_p2 = scmp.lt.u32.totalorder %s1026_s28, %s1406_s18 }
  0x61   : > { %p1029_p5 = pnand %p1028_p3, %p1027_p0  ;;  %p1034_p9 = por %p1033_p13, %p1032_p10 }
  0x63   : > { %p1030_p7 = pneg %p1029_p5  ;;  %p1036_p1 = por %p1035_p2, %p1034_p9 }
  0x65   : > { %p1037_p4 = pnand %p1036_p1, %p1030_p7 }
  0x67   : > { %1040 = shalt.err (!%p1037_p4)
}
  0x68   : > { %s1041_s29 = scalar_lea.vmem %s1414_s1, 128  ;;  %s1206_s23 = smov [#allocation2]  }
  0x69   : > { %p1042_p6 = scmp.ne.s32.totalorder %s1414_s1, %s1041_s29  ;;  %s1046_s20 = sshll.u32 %s1206_s23, 4  ;;  %s1047_s20 = int_to_ptr.vmem [resolvable:$false] %s1046_s20 }
  0x6a   : > { %s1048_s21 = scalar_lea.vmem %s1047_s20, 256  ;;  %p1049_p5 = scmp.lt.s32.totalorder %s1414_s1, %s1047_s20 }
  0x6b   : > { %p1044_p12 = pnand %p1042_p6, %p1028_p3  ;;  %p1050_p10 = scmp.lt.s32.totalorder %s1048_s21, %s1041_s29 }
  0x6d   : > { %p1045_p0 = pneg %p1044_p12  ;;  %p1051_p13 = por %p1050_p10, %p1049_p5 }
  0x6f   : > { %p1052_p9 = pnand %p1051_p13, %p1045_p0 }
  0x71   : > { %1055 = shalt.err (!%p1052_p9)
}
  0x72   : > { %891 = dma.hbm_to_vmem [thread:$0]  (!%p1410_p11), %s1406_s18, 128, %s1414_s1, %s347_s27  }
  0x73   : > { %p1646_p7 = scmp.ne.s32.totalorder %s1638_s19, 0 }
  0x74   : > { %s1444_s28 = sand.u32 (!%p1646_p7), 1, %s1186_s10   ;;  %p1647_p3 = scmp.ne.s32.totalorder (!%p1646_p7), %s1635_s17, 0 }
  0x75   : > { %367 = sbr.rel (%p1646_p7) target bundleno = 965 (0x3c5), region = 48  ;;  %s832_s16 = sshll.u32 (!%p1646_p7), %s1444_s28, 3 }
  0x76   : > { %s370_s25 = scalar_lea.sflag (!%p1646_p7), [#allocation3], %s1444_s28  ;;  %s373_s29 = scalar_lea.vmem (!%p1646_p7), [#allocation2], %s832_s16 }
  0x7c   : > { %1165 = dma.done.wait (%p1647_p3), %s370_s25, 128  }
  0x7d   : > { %1167 = vsyncadd (%p1647_p3), %s370_s25, 4294967168  ;;  %p1648_p2 = scmp.eq.s32.totalorder %s1299_s15, 0 }
  0x7f   : > { %1169 = dma.done.wait (%p1648_p2), [#allocation6], 256   ;;  %p1649_p11 = pmov %p1648_p2 }
  0x80   : > { %vm430_vm0 = vcmask 261120   ;;  %v427_v0 = vld [vmem:[%s373_s29] sm:$0xff]  ;;  %v1207_v8 = vmov 0.0   ;;  %vm1208_vm1 = vmmov 0   ;;  %v527_v10 = vld [vmem:[#allocation7] sm:$0xff]  ;;  %s1209_s18 = smov 48  }
  0x81   : > { %1171 = vsyncadd (%p1649_p11), [#allocation6], 4294967040  ;;  %v431_v1 = vsel %vm430_vm0, %v427_v0, 0.0  ;;  %v966_v7 = vld [vmem:[%s1619_s5] sm:$0xff]   ;;  %857 = vmatprep.subr.bf16.mxu0 %v1207_v8  ;;  %861 = vmatprep.mubr.msk.bf16.mxu0 %vm1208_vm1, %v1207_v8  ;;  %v967_v9 = vld [vmem:[%s1619_s5 + $0x8] sm:$0xff]   ;;  %s1210_s27 = smov 16  }
  0x82   : > { %432 = vadd.xlane.f32.xlu0 %v431_v1  ;;  %858 = vmatpush3.bf16.msra.mxu0 %v966_v7  ;;  %v1464_v11 = vld [vmem:[#allocation5] sm:$0xff]  ;;  %s1211_s23 = smov 32   ;;  %s1650_s3 = sld [smem:[#allocation20_spill]]  ;;  %v840_v26 = vld [vmem:[%s1620_s6] ss:$0 sm:$0xff]  ;;  %vm554_vm2 = vcmask 130048  }
  0x83   : > { %859 = vmatprep.subr.bf16.mxu0 %v1207_v8  ;;  %563 = vrot.lane.b32.xlu1 %v527_v10, %s1209_s18  ;;  %s1651_s4 = sld [smem:[#allocation21_spill]]  ;;  %s1212_s2 = smov 112   ;;  %vm557_vm3 = vcmask 257024  }
  0x84   : > { %s1213_s17 = smov 96   ;;  %s1214_s19 = smov 64  }
  0x85   : > { %s848_s20 = sshll.u32 %s1194_s12, 6 }
  0x86   : > { %860 = vmatpush3.bf16.msra.mxu0 %v967_v9  ;;  %s1504_s0 = scalar_lea.hbm %s1623_s9, %s848_s20 }
  0x87   : > { %576 = vrot.lane.b32.xlu1 %v1464_v11, %s1209_s18  ;;  %s1483_s18 = sshll.u32 %s1444_s28, 2 }
  0x88   : > { %v838_v16 = vld [vmem:[%s1650_s3] ss:$0 sm:$0xff]  ;;  %s418_s21 = scalar_lea.vmem [#allocation9], %s1483_s18  ;;  %s425_s25 = scalar_lea.vmem [#allocation11], %s1483_s18 }
  0x89   : > { %v839_v18 = vld [vmem:[%s1651_s4] ss:$0 sm:$0xff]  ;;  %s643_s16 = sshll.u32 %s418_s21, 4  ;;  %s657_s29 = sshll.u32 %s425_s25, 4  ;;  %s1499_s16 = int_to_ptr.vmem [resolvable:$true] %s643_s16  ;;  %s1506_s29 = int_to_ptr.vmem [resolvable:$true] %s657_s29 }
  0x8a   : > { %s1215_s3 = smov [#allocation9]  }
  0x8b   : > { %559 = vrot.lane.b32.xlu1 %v1464_v11, %s1211_s23 }
  0x8f   : > { %572 = vrot.lane.b32.xlu1 %v527_v10, %s1211_s23  ;;  %s609_s23 = sand.u32 1, %s1299_s15  }
  0x90   : > { %s1518_s12 = scalar_lea.sflag [#allocation10], %s609_s23 }
  0x93   : > { %530 = vrot.lane.b32.xlu1 %v527_v10, %s1210_s27 }
  0xf5   : > { %v564_v22 = vpop.permute.xlu1 %563 }
  0xf9   : > { %v577_v23 = vpop.permute.xlu1 %576 }
  0xfd   : > { %v560_v24 = vpop.permute.xlu1 %559 }
 0x101   : > { %v573_v25 = vpop.permute.xlu1 %572 }
 0x105   : > { %v531_v28 = vpop.permute.xlu1 %530 }
 0x10f   : > { %v433_v2 = vpop.xlane.xlu0 %432 }
 0x110   : > { %v435_v3 = vmul.f32 0.03125, %v433_v2 }
 0x112   : > { %v436_v4 = vsub.f32 %v427_v0, %v435_v3 }
 0x114   : > { %v437_v5 = vmul.f32 %v436_v4, %v436_v4 }
 0x116   : > { %v438_v6 = vsel %vm430_vm0, %v437_v5, 0.0 }
 0x117   : > { %439 = vadd.xlane.f32.xlu0 %v438_v6 }
 0x12d   : > { %541 = vrot.lane.b32.xlu0 %v1464_v11, %s1210_s27 }
 0x1a4   : > { %v440_v12 = vpop.xlane.xlu0 %439 }
 0x1a5   : > { %v441_v13 = vmul.f32 0.03125, %v440_v12 }
 0x1a7   : > { %v442_v14 = vadd.f32 1e-05, %v441_v13 }
 0x1a8   : > { %v542_v36 = vpop.permute.xlu0 %541 }
 0x1a9   : > { %968 = vrsqrt.f32 %v442_v14 }
 0x1b3   : > { %v969_v15 = vpop.eup %968 }
 0x1b4   : > { %v444_v17 = vmul.f32 %v969_v15, %v436_v4 }
 0x1b6   : > { %v451_v19 = vmul.f32 %v838_v16, %v444_v17 }
 0x1b8   : > { %v458_v20 = vadd.f32 %v839_v18, %v451_v19 }
 0x1ba   : > { %v459_v21 = vpack.c.bf16 %v458_v20, %v458_v20 }
 0x1bc   : > { %862 = vmatmul.mubr.msk.bf16.vlgmr.msra.gmra.mrb[0].mxu0 %vm430_vm0, %v459_v21 }
 0x28f   : > { %v520_v27 = vpop.f32.mrb[0].mxu0 }
 0x290   : > { %v521_v29 = vadd.f32 %v840_v26, %v520_v27  ;;  %v863_v30 = vpop.f32.mrb[1].mxu0 }
 0x291   : > { %v523_v31 = vpop.f32.mrb[2].mxu0 }
 0x292   : > { %v533_v32 = vmul.f32 %v531_v28, %v521_v29  ;;  %v864_v33 = vpop.f32.mrb[3].mxu0  ;;  %v566_v34 = vmul.f32 %v564_v22, %v521_v29  ;;  %v579_v35 = vmul.f32 %v577_v23, %v521_v29  ;;  %v544_v37 = vmul.f32 %v542_v36, %v521_v29 }
 0x293   : > { %v562_v38 = vmul.f32 %v560_v24, %v521_v29  ;;  %v575_v41 = vmul.f32 %v573_v25, %v521_v29  ;;  %v539_v44 = vmul.f32 %v527_v10, %v521_v29  ;;  %v853_v47 = vpack.c.bf16 %v521_v29, %v521_v29 }
 0x294   : > { %568 = vrot.lane.b32.xlu1 %v566_v34, %s1212_s2  ;;  %535 = vrot.lane.b32.xlu0 %v533_v32, %s1212_s2  ;;  %v528_v51 = vmul.f32 %v1464_v11, %v521_v29 }
 0x298   : > { %581 = vrot.lane.b32.xlu1 %v579_v35, %s1212_s2 }
 0x29c   : > { %546 = vrot.lane.b32.xlu1 %v544_v37, %s1212_s2 }
 0x306   : > { %v569_v39 = vpop.permute.xlu1 %568  ;;  %v536_v48 = vpop.permute.xlu0 %535 }
 0x307   : > { %v571_v40 = vsub.f32 %v562_v38, %v569_v39  ;;  %v538_v54 = vsub.f32 %v528_v51, %v536_v48 }
 0x309   : > { %586 = vrot.lane.b32.xlu1 %v571_v40, %s1213_s17  ;;  %s1629_s17 = scalar_lea.vmem [#allocation8], %s1483_s18 }
 0x30a   : > { %v582_v42 = vpop.permute.xlu1 %581  ;;  %s629_s15 = sshll.u32 %s1629_s17, 4  ;;  %s1512_s17 = scalar_lea.hbm %s1621_s7, %s848_s20  ;;  %s1514_s15 = int_to_ptr.vmem [resolvable:$true] %s629_s15 }
 0x30b   : > { %v584_v43 = vadd.f32 %v582_v42, %v575_v41 }
 0x30d   : > { %590 = vrot.lane.b32.xlu0 %v584_v43, %s1212_s2  ;;  %s1494_s2 = scalar_lea.hbm %s1622_s8, %s848_s20 }
 0x30e   : > { %v547_v45 = vpop.permute.xlu1 %546 }
 0x30f   : > { %v549_v46 = vadd.f32 %v547_v45, %v539_v44 }
 0x311   : > { %600 = vrot.lane.b32.xlu0 %v853_v47, %s1214_s19  ;;  %551 = vrot.lane.b32.xlu1 %v549_v46, %s1210_s27  ;;  %s1056_s19 = scalar_lea.vmem %s1499_s16, 64 }
 0x312   : > { %p1057_p1 = scmp.ne.s32.totalorder %s1499_s16, %s1056_s19 }
 0x314   : > { %p1058_p4 = pnand %p1057_p1, %p1392_p8 }
 0x316   : > { %p1059_p6 = pneg %p1058_p4 }
 0x37b   : > { %v587_v49 = vpop.permute.xlu1 %586 }
 0x37f   : > { %v591_v50 = vpop.permute.xlu0 %590 }
 0x380   : > { %v593_v52 = vsel %vm554_vm2, %v587_v49, %v591_v50 }
 0x381   : > { %v594_v53 = vpack.c.bf16 %v593_v52, %v593_v52 }
 0x383   : > { %v552_v55 = vpop.permute.xlu1 %551  ;;  %v601_v56 = vpop.permute.xlu0 %600  ;;  %595 = vst.msk [vmem:[%s418_s21] sm:$0xf] %vm557_vm3, %v594_v53  ;;  %s1060_s21 = sshll.u32 %s1215_s3, 4  ;;  %s1061_s21 = int_to_ptr.vmem [resolvable:$false] %s1060_s21 }
 0x384   : > { %v555_v57 = vsel %vm554_vm2, %v538_v54, %v552_v55  ;;  %603 = vst.msk [vmem:[%s425_s25] sm:$0xf] %vm557_vm3, %v601_v56  ;;  %s1062_s4 = scalar_lea.vmem %s1061_s21, 128  ;;  %p1063_p12 = scmp.lt.s32.totalorder %s1499_s16, %s1061_s21 }
 0x385   : > { %p1064_p0 = scmp.lt.s32.totalorder %s1062_s4, %s1056_s19 }
 0x387   : > { %p1065_p5 = por %p1064_p0, %p1063_p12 }
 0x389   : > { %p1066_p10 = pnand %p1065_p5, %p1059_p6 }
 0x38b   : > { %1069 = shalt.err (!%p1066_p10)
}
 0x38c   : > { %s1070_s23 = scalar_lea.hbm %s1494_s2, 64  ;;  %s1074_s3 = scalar_lea.hbm %s1622_s8, 128 }
 0x38d   : > { %p1071_p13 = scmp.ne.s32.totalorder %s1494_s2, %s1070_s23  ;;  %p1075_p3 = scmp.lt.u32.totalorder %s1494_s2, %s1622_s8 }
 0x38e   : > { %p1076_p2 = scmp.lt.u32.totalorder %s1074_s3, %s1070_s23  ;;  %p1078_p1 = scmp.lt.u32.totalorder %s1070_s23, %s1494_s2 }
 0x38f   : > { %p1072_p9 = pnand %p1071_p13, %p1392_p8 }
 0x390   : > { %p1077_p11 = por %p1076_p2, %p1075_p3 }
 0x391   : > { %p1073_p7 = pneg %p1072_p9 }
 0x392   : > { %p1079_p4 = por %p1078_p1, %p1077_p11 }
 0x394   : > { %p1080_p6 = pnand %p1079_p4, %p1073_p7 }
 0x396   : > { %1083 = shalt.err (!%p1080_p6)
}
 0x397   : > { %876 = dma.vmem_to_hbm [thread:$0]  (%p1392_p8), %s1499_s16, 64, %s1494_s2, %s1518_s12   ;;  %v556_v58 = vpack.c.bf16 %v555_v57, %v555_v57 }
 0x398   : > { %s1084_s4 = scalar_lea.vmem %s1506_s29, 64  ;;  %s1216_s19 = smov [#allocation11]  }
 0x399   : > { %p1085_p12 = scmp.ne.s32.totalorder %s1506_s29, %s1084_s4  ;;  %s1088_s21 = sshll.u32 %s1216_s19, 4  ;;  %s1089_s21 = int_to_ptr.vmem [resolvable:$false] %s1088_s21 }
 0x39a   : > { %s1090_s23 = scalar_lea.vmem %s1089_s21, 128  ;;  %p1091_p10 = scmp.lt.s32.totalorder %s1506_s29, %s1089_s21 }
 0x39b   : > { %p1086_p0 = pnand %p1085_p12, %p1392_p8  ;;  %p1092_p13 = scmp.lt.s32.totalorder %s1090_s23, %s1084_s4 }
 0x39d   : > { %p1087_p5 = pneg %p1086_p0  ;;  %p1093_p9 = por %p1092_p13, %p1091_p10 }
 0x39f   : > { %p1094_p7 = pnand %p1093_p9, %p1087_p5 }
 0x3a1   : > { %1097 = shalt.err (!%p1094_p7)
}
 0x3a2   : > { %s1098_s16 = scalar_lea.hbm %s1504_s0, 64  ;;  %s1102_s25 = scalar_lea.hbm %s1623_s9, 128 }
 0x3a3   : > { %p1099_p3 = scmp.ne.s32.totalorder %s1504_s0, %s1098_s16  ;;  %p1103_p1 = scmp.lt.u32.totalorder %s1504_s0, %s1623_s9 }
 0x3a4   : > { %p1104_p4 = scmp.lt.u32.totalorder %s1102_s25, %s1098_s16  ;;  %p1106_p12 = scmp.lt.u32.totalorder %s1098_s16, %s1504_s0 }
 0x3a5   : > { %p1100_p2 = pnand %p1099_p3, %p1392_p8 }
 0x3a6   : > { %p1105_p6 = por %p1104_p4, %p1103_p1 }
 0x3a7   : > { %p1101_p11 = pneg %p1100_p2 }
 0x3a8   : > { %p1107_p0 = por %p1106_p12, %p1105_p6 }
 0x3aa   : > { %p1108_p5 = pnand %p1107_p0, %p1101_p11 }
 0x3ac   : > { %1111 = shalt.err (!%p1108_p5)
}
 0x3ad   : > { %877 = dma.vmem_to_hbm [thread:$0]  (%p1392_p8), %s1506_s29, 64, %s1504_s0, %s1518_s12  }
 0x3ae   : > { %s1652_s1 = scalar_lea.vmem [#allocation8], %s1483_s18  ;;  %s605_s4 = scalar_lea.sflag [#allocation4], %s1444_s28 }
 0x3af   : > { %558 = vst.msk [vmem:[%s1652_s1] sm:$0xf] %vm557_vm3, %v556_v58  ;;  %s1112_s19 = scalar_lea.vmem %s1514_s15, 64  ;;  %s1217_s21 = smov [#allocation8]  }
 0x3b0   : > { %p1113_p10 = scmp.ne.s32.totalorder %s1514_s15, %s1112_s19  ;;  %s1116_s23 = sshll.u32 %s1217_s21, 4  ;;  %s1117_s23 = int_to_ptr.vmem [resolvable:$false] %s1116_s23 }
 0x3b1   : > { %s1118_s16 = scalar_lea.vmem %s1117_s23, 128  ;;  %p1119_p7 = scmp.lt.s32.totalorder %s1514_s15, %s1117_s23 }
 0x3b2   : > { %p1114_p13 = pnand %p1113_p10, %p1392_p8  ;;  %p1120_p3 = scmp.lt.s32.totalorder %s1118_s16, %s1112_s19 }
 0x3b4   : > { %p1115_p9 = pneg %p1114_p13  ;;  %p1121_p2 = por %p1120_p3, %p1119_p7 }
 0x3b6   : > { %p1122_p11 = pnand %p1121_p2, %p1115_p9 }
 0x3b8   : > { %1125 = shalt.err (!%p1122_p11)
}
 0x3b9   : > { %s1126_s0 = scalar_lea.hbm %s1512_s17, 64  ;;  %s1130_s29 = scalar_lea.hbm %s1621_s7, 128 }
 0x3ba   : > { %p1127_p1 = scmp.ne.s32.totalorder %s1512_s17, %s1126_s0  ;;  %p1131_p12 = scmp.lt.u32.totalorder %s1512_s17, %s1621_s7 }
 0x3bb   : > { %p1132_p0 = scmp.lt.u32.totalorder %s1130_s29, %s1126_s0  ;;  %p1134_p10 = scmp.lt.u32.totalorder %s1126_s0, %s1512_s17 }
 0x3bc   : > { %p1128_p4 = pnand %p1127_p1, %p1392_p8 }
 0x3bd   : > { %p1133_p5 = por %p1132_p0, %p1131_p12 }
 0x3be   : > { %p1129_p6 = pneg %p1128_p4 }
 0x3bf   : > { %p1135_p13 = por %p1134_p10, %p1133_p5 }
 0x3c1   : > { %p1136_p9 = pnand %p1135_p13, %p1129_p6 }
 0x3c3   : > { %1139 = shalt.err (!%p1136_p9)
}
 0x3c4   : > { %875 = dma.vmem_to_hbm [thread:$0]  (%p1392_p8), %s1514_s15, 64, %s1512_s17, %s605_s4  }
 0x3c5 PF: > { %s1653_s20 = sld [smem:[#allocation16_spill]]  ;;  %s669_s25 = sand.u32 1, %s1182_s30  }
 0x3c6   : > { %p1655_p3 = scmp.ge.s32.totalorder %s1202_s14, 2  ;;  %s670_s3 = scalar_lea.sflag [#allocation4], %s669_s25 }
 0x3cb   : > { %p1654_p7 = scmp.ne.s32.totalorder %s1653_s20, 0 }
 0x3cd   : > { %p893_p2 = pnand %p1655_p3, %p1654_p7 }
 0x3cf   : > { %1173 = dma.done.wait (!%p893_p2), %s670_s3, 64  }
 0x3d0   : > { %1175 = vsyncadd (!%p893_p2), %s670_s3, 4294967232  ;;  %s1656_s27 = sadd.s32 4294967294, %s1202_s14  }
 0x3d1   : > { %s678_s1 = sand.u32 1, %s1656_s27  }
 0x3d2   : > { %s679_s19 = scalar_lea.sflag [#allocation10], %s678_s1 }
 0x3d3   : > { %1177 = dma.done.wait (!%p893_p2), %s679_s19, 128  }
 0x3d4   : > { %1179 = vsyncadd (!%p893_p2), %s679_s19, 4294967168  ;;  %s30_s14 = sadd.s32 1, %s1202_s14   ;;  %s1657_s30 = smov %s1186_s10 }
 0x3d5   : > { %p27_p8 = scmp.ge.s32.totalorder %s30_s14, 4   ;;  %s1658_s10 = smov %s1190_s11 }
 0x3d6   : > { %s1659_s11 = smov %s1401_s22  ;;  %s1660_s12 = smov %s1198_s13 }
 0x3d7   : > { %s1661_s13 = smov %s1663_s26  ;;  %29 = sbr.rel (!%p27_p8) target bundleno = 15 (0xf), region = 135 }
 0x3de   :  { %693 = vsyncpa [#allocation3], 1 }
 0x3df   :  { %695 = vsyncpa [#allocation3 + $0x1], 1 }
 0x3e0   :  { %696 = vsyncpa [#allocation6], 1 }
 0x3e1   :  { %697 = vsyncpa [#allocation4], 1 }
 0x3e2   :  { %699 = vsyncpa [#allocation4 + $0x1], 1 }
 0x3e3   :  { %700 = vsyncpa [#allocation10], 1 }
 0x3e4   :  { %702 = vsyncpa [#allocation10 + $0x1], 1 }

</bundles_post_ra>
